<compile_context>
chip_gen: v7x
topology: tpu7x:2x2x1
jax: 0.10.0
libtpu: 0.0.40
codegen_flags: <defaults>
</compile_context>

<pallas_src>
from functools import partial

import jax
import jax.numpy as jnp
from jax.experimental import pallas as pl
from jax.experimental.pallas import tpu as pltpu


def _round_up(x, m):
    return ((x + m - 1) // m) * m


# ---------------------------------------------------------------------------
# Kernel
# ---------------------------------------------------------------------------
def neumf_kernel(x_ref, p_ref, out_ref, *, d_mlp, d_mf, layer_dims, bands):
    """One batch tile of the NeuMF forward pass.

    x_ref:   (TILE_B, 2*d_mlp + 2*d_mf) gathered embeddings, natural layout
             [u_mlp | u_mf | i_mlp | i_mf] per row.
    p_ref:   packed weight/bias slab, VMEM-resident across the grid.
    out_ref: (1, TILE_B) logits, batch on the 128-lane axis (lane-dense store).
    """
    feat = 2 * (d_mlp + d_mf)

    # Single per-tile transpose on the XLU: batch -> lane axis.  Everything
    # downstream (VPU, MXU, the output store) is then lane-dense.
    xT = jnp.transpose(x_ref[...])                        # (feat, TILE_B)

    u_mlp = xT[0:d_mlp, :]
    u_mf = xT[d_mlp:d_mlp + d_mf, :]
    i_mlp = xT[d_mlp + d_mf:2 * d_mlp + d_mf, :]
    i_mf = xT[2 * d_mlp + d_mf:feat, :]

    # GMF branch (VPU elementwise).
    mf = u_mf * i_mf                                      # (d_mf, TILE_B)

    def band(name, rows, cols):
        r0 = bands[name]                                  # static python int
        return p_ref[r0:r0 + rows, 0:cols]

    # MLP branch.  fc0 acts on concat([u_mlp, i_mlp]); split its weight into
    # user/item halves instead of concatenating rows in-kernel.
    out0 = layer_dims[1]
    w0 = band("w0", out0, 2 * d_mlp)                      # (out0, 2*d_mlp)
    b0 = band("b0", out0, 1)                              # (out0, 1)
    h = (jnp.dot(w0[:, :d_mlp], u_mlp, preferred_element_type=jnp.float32)
         + jnp.dot(w0[:, d_mlp:], i_mlp, preferred_element_type=jnp.float32)
         + b0)
    h = jnp.maximum(h, 0.0)

    for li in range(1, len(layer_dims) - 1):
        in_d, out_d = layer_dims[li], layer_dims[li + 1]
        w = band(f"w{li}", out_d, in_d)
        b = band(f"b{li}", out_d, 1)
        h = jnp.maximum(
            jnp.dot(w, h, preferred_element_type=jnp.float32) + b, 0.0)

    # Final affine over concat([h, mf]) as VPU multiply + sublane sums.
    wo_mlp = band("wo_mlp", layer_dims[-1], 1)            # (layers[-1], 1)
    wo_mf = band("wo_mf", d_mf, 1)                        # (d_mf, 1)
    bo = band("bo", 1, 1)                                 # (1, 1)
    logit = (jnp.sum(wo_mlp * h, axis=0, keepdims=True)
             + jnp.sum(wo_mf * mf, axis=0, keepdims=True)
             + bo)                                        # (1, TILE_B)
    out_ref[...] = logit.astype(out_ref.dtype)


# ---------------------------------------------------------------------------
# Parameter packing (done once, outside the per-call hot path)
# ---------------------------------------------------------------------------
def pack_params(params):
    """Pre-concatenate embedding tables (2 gathers instead of 4) and pack all
    fc/affine weights + biases into one sublane-aligned f32 slab (single
    VMEM-resident operand with a constant index_map)."""
    d_mlp = params["emb_user_mlp"].shape[1]
    d_mf = params["emb_user_mf"].shape[1]

    user_table = jnp.concatenate(
        [params["emb_user_mlp"], params["emb_user_mf"]], axis=-1)
    item_table = jnp.concatenate(
        [params["emb_item_mlp"], params["emb_item_mf"]], axis=-1)

    n_fc = 0
    while f"fc{n_fc}_w" in params:
        n_fc += 1
    layer_dims = tuple([params["fc0_w"].shape[1]]
                       + [params[f"fc{i}_w"].shape[0] for i in range(n_fc)])
    assert layer_dims[0] == 2 * d_mlp, "layers[0] must equal 2*latent_dim_mlp"
    assert params["affine_w"].shape[1] == layer_dims[-1] + d_mf

    items = []
    for i in range(n_fc):
        items.append((f"w{i}", params[f"fc{i}_w"]))
    for i in range(n_fc):
        items.append((f"b{i}", params[f"fc{i}_b"][:, None]))
    wo = params["affine_w"]
    items.append(("wo_mlp", wo[0, :layer_dims[-1]][:, None]))
    items.append(("wo_mf", wo[0, layer_dims[-1]:][:, None]))
    items.append(("bo", params["affine_b"][:, None]))

    width = max(a.shape[1] for _, a in items)
    bands, rows, cursor = {}, [], 0
    for name, arr in items:
        bands[name] = cursor                              # sublane-aligned
        rows.append((cursor, arr))
        cursor += _round_up(arr.shape[0], 8)
    slab = jnp.zeros((_round_up(cursor, 8), width), jnp.float32)
    for r0, arr in rows:
        slab = slab.at[r0:r0 + arr.shape[0], 0:arr.shape[1]].set(
            arr.astype(jnp.float32))

    return dict(user_table=user_table, item_table=item_table, slab=slab,
                bands=bands, d_mlp=d_mlp, d_mf=d_mf, layer_dims=layer_dims)


# ---------------------------------------------------------------------------
# Forward wrapper
# ---------------------------------------------------------------------------
def make_neumf_forward(params, *, tile_b_cap=16384):
    """Returns forward(user_indices, item_indices) -> (B, 1) logits."""
    packed = pack_params(params)
    user_table = packed["user_table"]
    item_table = packed["item_table"]
    slab = packed["slab"]

    kernel = partial(neumf_kernel,
                     d_mlp=packed["d_mlp"], d_mf=packed["d_mf"],
                     layer_dims=packed["layer_dims"], bands=packed["bands"])

    @jax.jit
    def _forward(user_indices, item_indices, user_table, item_table, slab):
        # Embedding gathers stay in XLA (tiny rows are below efficient
        # in-kernel DMA granularity); one two-way concat builds the x slab.
        u = jnp.take(user_table, user_indices, axis=0)     # (B, d_mlp+d_mf)
        it = jnp.take(item_table, item_indices, axis=0)    # (B, d_mlp+d_mf)
        x = jnp.concatenate([u, it], axis=-1)              # (B, feat)
        B, feat = x.shape

        # Pad the batch only to the 128-lane granule; large tiles use a
        # partial edge block instead (HBM traffic stays ~= real batch size).
        B_pad = _round_up(B, 128)
        if B_pad != B:
            x = jnp.pad(x, ((0, B_pad - B), (0, 0)))

        # Tile sizing: large enough to amortize the ~0.35 us per-grid-step
        # cost, small enough to double-buffer in scoped VMEM everywhere and to
        # give >= ~8 grid steps on large batches (v7x dual-TensorCore sharding).
        TILE_B = min(tile_b_cap,
                     max(4096, _round_up(-(-B // 8), 128)),
                     B_pad)
        grid = (pl.cdiv(B_pad, TILE_B),)

        # x blocks are lane-padded in VMEM (feat < 128): ~TILE_B*512 B/buffer.
        vmem_limit = int(16 * 2 ** 20 + 4 * TILE_B * 512)

        out = pl.pallas_call(
            kernel,
            out_shape=jax.ShapeDtypeStruct((1, B_pad), jnp.float32),
            grid=grid,
            in_specs=[
                pl.BlockSpec((TILE_B, feat), lambda i: (i, 0)),
                pl.BlockSpec(slab.shape, lambda i: (0, 0)),  # VMEM-resident
            ],
            out_specs=pl.BlockSpec((1, TILE_B), lambda i: (0, i)),
            compiler_params=pltpu.CompilerParams(
                dimension_semantics=("parallel",),
                vmem_limit_bytes=vmem_limit),
        )(x, slab)

        return jnp.transpose(out[:, :B])                   # (B, 1)

    def forward(user_indices, item_indices):
        return _forward(user_indices, item_indices, user_table, item_table, slab)

    return forward


# ---------------------------------------------------------------------------
# Parameter init + pure-JAX reference (matches the PyTorch module semantics)
# ---------------------------------------------------------------------------
def init_params(key, num_users, num_items, latent_dim_mf=8, latent_dim_mlp=8,
                layers=(16, 32, 16, 8)):
    keys = jax.random.split(key, 16)
    p = {}
    p["emb_user_mlp"] = 0.1 * jax.random.normal(keys[0], (num_users, latent_dim_mlp), jnp.float32)
    p["emb_item_mlp"] = 0.1 * jax.random.normal(keys[1], (num_items, latent_dim_mlp), jnp.float32)
    p["emb_user_mf"] = 0.1 * jax.random.normal(keys[2], (num_users, latent_dim_mf), jnp.float32)
    p["emb_item_mf"] = 0.1 * jax.random.normal(keys[3], (num_items, latent_dim_mf), jnp.float32)
    # fc layers: PyTorch convention, weight shape (out, in)
    for idx, (in_size, out_size) in enumerate(zip(layers[:-1], layers[1:])):
        p[f"fc{idx}_w"] = 0.1 * jax.random.normal(keys[4 + 2 * idx], (out_size, in_size), jnp.float32)
        p[f"fc{idx}_b"] = 0.01 * jax.random.normal(keys[5 + 2 * idx], (out_size,), jnp.float32)
    p["affine_w"] = 0.1 * jax.random.normal(keys[12], (1, layers[-1] + latent_dim_mf), jnp.float32)
    p["affine_b"] = 0.01 * jax.random.normal(keys[13], (1,), jnp.float32)
    return p


def reference_forward(params, user_indices, item_indices):
    u_mlp = params["emb_user_mlp"][user_indices]
    i_mlp = params["emb_item_mlp"][item_indices]
    u_mf = params["emb_user_mf"][user_indices]
    i_mf = params["emb_item_mf"][item_indices]
    mlp_vector = jnp.concatenate([u_mlp, i_mlp], axis=-1)
    mf_vector = u_mf * i_mf
    n_fc = 0
    while f"fc{n_fc}_w" in params:
        n_fc += 1
    for idx in range(n_fc):
        mlp_vector = jnp.dot(mlp_vector, params[f"fc{idx}_w"].T,
                             precision=jax.lax.Precision.HIGHEST) + params[f"fc{idx}_b"]
        mlp_vector = jnp.maximum(mlp_vector, 0.0)
    vector = jnp.concatenate([mlp_vector, mf_vector], axis=-1)
    return jnp.dot(vector, params["affine_w"].T,
                   precision=jax.lax.Precision.HIGHEST) + params["affine_b"]


if __name__ == "__main__":
    num_users, num_items, batch = 32, 48, 8
    key = jax.random.PRNGKey(0)
    k_params, k_u, k_i = jax.random.split(key, 3)

    params = init_params(k_params, num_users, num_items)
    user_indices = jax.random.randint(k_u, (batch,), 0, num_users, dtype=jnp.int32)
    item_indices = jax.random.randint(k_i, (batch,), 0, num_items, dtype=jnp.int32)

    forward = make_neumf_forward(params)
    out = jax.block_until_ready(forward(user_indices, item_indices))

    ref = reference_forward(params, user_indices, item_indices)
    assert out.shape == (batch, 1), out.shape
    # Tolerance covers possible MXU multi-pass precision differences between
    # the XLA reference matmuls and the in-kernel matmul path.
    assert jnp.allclose(out, ref, atol=5e-4, rtol=5e-3), (out, ref)

    print("KERNEL_OK")
</pallas_src>

<mosaic_0001>
module attributes {stable_mosaic.version = 11 : i64} {
  func.func @neumf_kernel(%arg0: i32, %arg1: memref<128x32xf32, #tpu.memory_space<vmem>>, %arg2: memref<136x32xf32, #tpu.memory_space<vmem>>, %arg3: memref<1x128xf32, #tpu.memory_space<vmem>>) attributes {dimension_semantics = [#tpu.dimension_semantics<parallel>], iteration_bounds = array<i64: 1>, scalar_prefetch = 0 : i64, scratch_operands = 0 : i64, tpu.core_type = #tpu.core_type<tc>, window_params = [{transform_indices = @transform_0, window_bounds = array<i64: 128, 32>}, {pipeline_mode = #tpu.pipeline_mode<synchronous>, transform_indices = @transform_1, window_bounds = array<i64: 136, 32>}, {transform_indices = @transform_2, window_bounds = array<i64: 1, 128>}]} {
    %c0 = arith.constant 0 : index
    %c0_0 = arith.constant 0 : index
    %0 = vector.load %arg1[%c0, %c0_0] : memref<128x32xf32, #tpu.memory_space<vmem>>, vector<128x32xf32>
    %1 = tpu.transpose %0, [1, 0] : vector<128x32xf32> -> vector<32x128xf32>
    %2 = vector.extract_strided_slice %1 {offsets = [0, 0], sizes = [8, 128], strides = [1, 1]} : vector<32x128xf32> to vector<8x128xf32>
    %3 = vector.extract_strided_slice %1 {offsets = [8, 0], sizes = [8, 128], strides = [1, 1]} : vector<32x128xf32> to vector<8x128xf32>
    %4 = vector.extract_strided_slice %1 {offsets = [16, 0], sizes = [8, 128], strides = [1, 1]} : vector<32x128xf32> to vector<8x128xf32>
    %5 = vector.extract_strided_slice %1 {offsets = [24, 0], sizes = [8, 128], strides = [1, 1]} : vector<32x128xf32> to vector<8x128xf32>
    %6 = arith.mulf %3, %5 : vector<8x128xf32>
    %c0_1 = arith.constant 0 : index
    %c0_2 = arith.constant 0 : index
    %7 = vector.load %arg2[%c0_1, %c0_2] : memref<136x32xf32, #tpu.memory_space<vmem>>, vector<32x16xf32>
    %c56 = arith.constant 56 : index
    %c0_3 = arith.constant 0 : index
    %8 = vector.load %arg2[%c56, %c0_3] : memref<136x32xf32, #tpu.memory_space<vmem>>, vector<32x1xf32>
    %9 = vector.extract_strided_slice %7 {offsets = [0, 0], sizes = [32, 8], strides = [1, 1]} : vector<32x16xf32> to vector<32x8xf32>
    %cst = arith.constant dense<0.000000e+00> : vector<32x128xf32>
    %10 = tpu.matmul %9, %2, %cst {dimension_numbers = #tpu.dot_dimension_numbers<[1], [0], [0], [1], [0, 0, 1, 1], [], []>} : vector<32x8xf32>, vector<8x128xf32>, vector<32x128xf32> -> vector<32x128xf32>
    %11 = vector.extract_strided_slice %7 {offsets = [0, 8], sizes = [32, 8], strides = [1, 1]} : vector<32x16xf32> to vector<32x8xf32>
    %cst_4 = arith.constant dense<0.000000e+00> : vector<32x128xf32>
    %12 = tpu.matmul %11, %4, %cst_4 {dimension_numbers = #tpu.dot_dimension_numbers<[1], [0], [0], [1], [0, 0, 1, 1], [], []>} : vector<32x8xf32>, vector<8x128xf32>, vector<32x128xf32> -> vector<32x128xf32>
    %13 = arith.addf %10, %12 : vector<32x128xf32>
    %14 = vector.broadcast %8 : vector<32x1xf32> to vector<32x128xf32>
    %15 = arith.addf %13, %14 : vector<32x128xf32>
    %cst_5 = arith.constant 0.000000e+00 : f32
    %16 = vector.broadcast %cst_5 : f32 to vector<32x128xf32>
    %17 = arith.maximumf %15, %16 : vector<32x128xf32>
    %c32 = arith.constant 32 : index
    %c0_6 = arith.constant 0 : index
    %18 = vector.load %arg2[%c32, %c0_6] : memref<136x32xf32, #tpu.memory_space<vmem>>, vector<16x32xf32>
    %c88 = arith.constant 88 : index
    %c0_7 = arith.constant 0 : index
    %19 = vector.load %arg2[%c88, %c0_7] : memref<136x32xf32, #tpu.memory_space<vmem>>, vector<16x1xf32>
    %cst_8 = arith.constant dense<0.000000e+00> : vector<16x128xf32>
    %20 = tpu.matmul %18, %17, %cst_8 {dimension_numbers = #tpu.dot_dimension_numbers<[1], [0], [0], [1], [0, 0, 1, 1], [], []>} : vector<16x32xf32>, vector<32x128xf32>, vector<16x128xf32> -> vector<16x128xf32>
    %21 = vector.broadcast %19 : vector<16x1xf32> to vector<16x128xf32>
    %22 = arith.addf %20, %21 : vector<16x128xf32>
    %cst_9 = arith.constant 0.000000e+00 : f32
    %23 = vector.broadcast %cst_9 : f32 to vector<16x128xf32>
    %24 = arith.maximumf %22, %23 : vector<16x128xf32>
    %c48 = arith.constant 48 : index
    %c0_10 = arith.constant 0 : index
    %25 = vector.load %arg2[%c48, %c0_10] : memref<136x32xf32, #tpu.memory_space<vmem>>, vector<8x16xf32>
    %c104 = arith.constant 104 : index
    %c0_11 = arith.constant 0 : index
    %26 = vector.load %arg2[%c104, %c0_11] : memref<136x32xf32, #tpu.memory_space<vmem>>, vector<8x1xf32>
    %cst_12 = arith.constant dense<0.000000e+00> : vector<8x128xf32>
    %27 = tpu.matmul %25, %24, %cst_12 {dimension_numbers = #tpu.dot_dimension_numbers<[1], [0], [0], [1], [0, 0, 1, 1], [], []>} : vector<8x16xf32>, vector<16x128xf32>, vector<8x128xf32> -> vector<8x128xf32>
    %28 = vector.broadcast %26 : vector<8x1xf32> to vector<8x128xf32>
    %29 = arith.addf %27, %28 : vector<8x128xf32>
    %cst_13 = arith.constant 0.000000e+00 : f32
    %30 = vector.broadcast %cst_13 : f32 to vector<8x128xf32>
    %31 = arith.maximumf %29, %30 : vector<8x128xf32>
    %c112 = arith.constant 112 : index
    %c0_14 = arith.constant 0 : index
    %32 = vector.load %arg2[%c112, %c0_14] : memref<136x32xf32, #tpu.memory_space<vmem>>, vector<8x1xf32>
    %c120 = arith.constant 120 : index
    %c0_15 = arith.constant 0 : index
    %33 = vector.load %arg2[%c120, %c0_15] : memref<136x32xf32, #tpu.memory_space<vmem>>, vector<8x1xf32>
    %c128 = arith.constant 128 : index
    %c0_16 = arith.constant 0 : index
    %34 = vector.load %arg2[%c128, %c0_16] : memref<136x32xf32, #tpu.memory_space<vmem>>, vector<1x1xf32>
    %35 = vector.broadcast %32 : vector<8x1xf32> to vector<8x128xf32>
    %36 = arith.mulf %35, %31 : vector<8x128xf32>
    %cst_17 = arith.constant dense<0.000000e+00> : vector<128xf32>
    %37 = vector.multi_reduction <add>, %36, %cst_17 [0] : vector<8x128xf32> to vector<128xf32>
    %38 = vector.shape_cast %37 : vector<128xf32> to vector<1x128xf32>
    %39 = vector.broadcast %33 : vector<8x1xf32> to vector<8x128xf32>
    %40 = arith.mulf %39, %6 : vector<8x128xf32>
    %cst_18 = arith.constant dense<0.000000e+00> : vector<128xf32>
    %41 = vector.multi_reduction <add>, %40, %cst_18 [0] : vector<8x128xf32> to vector<128xf32>
    %42 = vector.shape_cast %41 : vector<128xf32> to vector<1x128xf32>
    %43 = arith.addf %38, %42 : vector<1x128xf32>
    %44 = vector.broadcast %34 : vector<1x1xf32> to vector<1x128xf32>
    %45 = arith.addf %43, %44 : vector<1x128xf32>
    %c0_19 = arith.constant 0 : index
    %c0_20 = arith.constant 0 : index
    %46 = vector.load %arg3[%c0_19, %c0_20] : memref<1x128xf32, #tpu.memory_space<vmem>>, vector<1x128xf32>
    tpu.vector_store %arg3[%c0_19, %c0_20], %45 {strides = array<i32>} : memref<1x128xf32, #tpu.memory_space<vmem>>, vector<1x128xf32>,
    return
  }
  func.func @transform_0(%arg0: i32) -> (i32, i32) {
    %c0_i32 = arith.constant 0 : i32
    %c0_i32_0 = arith.constant 0 : i32
    return %arg0, %c0_i32 : i32, i32
  }
  func.func @transform_1(%arg0: i32) -> (i32, i32) {
    %c0_i32 = arith.constant 0 : i32
    %c0_i32_0 = arith.constant 0 : i32
    %c0_i32_1 = arith.constant 0 : i32
    return %c0_i32, %c0_i32_0 : i32, i32
  }
  func.func @transform_2(%arg0: i32) -> (i32, i32) {
    %c0_i32 = arith.constant 0 : i32
    %c0_i32_0 = arith.constant 0 : i32
    return %c0_i32, %arg0 : i32, i32
  }
}

</mosaic_0001>

<bundles_post_ra>
// kernel: _forward.1
= control target key start
LH: loop header
LB: loop body
LE: loop exit
PB: predicated region body
PF: predicated region fallthrough
CT: control target
= control target key end

     0   :  { %v600_v2 = vmov 0   ;;  %s601_s13 = smov 120   ;;  %vm80_vm0 = vcmask 64512   ;;  %vm309_vm1 = vcmask 261120   ;;  %v602_v58 = vmov 0.0|0.0   ;;  %s753_s1 = inlined_call_operand.vmem [shape: f32[136,32], index: 1, kind: input, shape index: {}]   ;;  %s754_s0 = inlined_call_operand.vmem [shape: f32[128,32], index: 0, kind: input, shape index: {}]   ;;  %s755_s2 = inlined_call_operand.vmem [shape: f32[1,128], index: 2, kind: output, shape index: {}]  }
   0x1   :  { %v623_v0 = vld [vmem:[%s753_s1] sm:$0xff]  ;;  %v628_v1 = vld [vmem:[%s753_s1 + $0x10] sm:$0xff]  ;;  %598 = vset.pattern.permute.xlu1 %v600_v2  ;;  %v636_v3 = vld [vmem:[%s753_s1 + $0x8] sm:$0xff]  ;;  %vm603_vm2 = vmmov 0   ;;  %v604_v59 = vmov 0.0   ;;  %vm400_vm3 = vcmask 130048  }
   0x2   :  { %72 = vrot.lane.b32.xlu0 %v623_v0, %s601_s13  ;;  %76 = vrot.lane.b32.xlu1 %v628_v1, %s601_s13  ;;  %v641_v4 = vld [vmem:[%s753_s1 + $0x18] sm:$0xff]  ;;  %v65_v6 = vld [vmem:[%s753_s1 + $0x40] sm:$0xff] }
   0x3   :  { %v64_v5 = vld [vmem:[%s753_s1 + $0x38] sm:$0xff]  ;;  %v66_v7 = vld [vmem:[%s753_s1 + $0x48] sm:$0xff]  ;;  %v67_v8 = vld [vmem:[%s753_s1 + $0x50] sm:$0xff] }
   0x4   :  { %v297_v9 = vld [vmem:[%s753_s1 + $0x58] sm:$0xff]  ;;  %v298_v10 = vld [vmem:[%s753_s1 + $0x60] sm:$0xff]  ;;  %v394_v11 = vld [vmem:[%s753_s1 + $0x68] sm:$0xff] }
   0x5   :  { %v11_v12 = vld [vmem:[%s754_s0] sm:$0xff]  ;;  %v475_v13 = vld [vmem:[%s753_s1 + $0x70] sm:$0xff]  ;;  %v12_v14 = vld [vmem:[%s754_s0 + $0x8] sm:$0xff] }
   0x6   :  { %74 = vrot.lane.b32.xlu0 %v636_v3, %s601_s13  ;;  %78 = vrot.lane.b32.xlu1 %v641_v4, %s601_s13  ;;  %v476_v15 = vld [vmem:[%s753_s1 + $0x78] sm:$0xff]  ;;  %v13_v16 = vld [vmem:[%s754_s0 + $0x10] sm:$0xff] }
   0x7   :  { %v14_v17 = vld [vmem:[%s754_s0 + $0x18] sm:$0xff]  ;;  %v15_v18 = vld [vmem:[%s754_s0 + $0x20] sm:$0xff]  ;;  %v16_v19 = vld [vmem:[%s754_s0 + $0x28] sm:$0xff] }
   0x8   :  { %v17_v20 = vld [vmem:[%s754_s0 + $0x30] sm:$0xff]  ;;  %v18_v21 = vld [vmem:[%s754_s0 + $0x38] sm:$0xff]  ;;  %v477_v22 = vld [vmem:[%s753_s1 + $0x80] sm:$0x1] }
   0x9   :  { %v19_v23 = vld [vmem:[%s754_s0 + $0x40] sm:$0xff]  ;;  %v20_v24 = vld [vmem:[%s754_s0 + $0x48] sm:$0xff]  ;;  %v21_v25 = vld [vmem:[%s754_s0 + $0x50] sm:$0xff] }
   0xa   :  { %269 = vperm.xlu1 %598, %v64_v5   ;;  %v22_v26 = vld [vmem:[%s754_s0 + $0x58] sm:$0xff]  ;;  %v23_v27 = vld [vmem:[%s754_s0 + $0x60] sm:$0xff]  ;;  %v24_v28 = vld [vmem:[%s754_s0 + $0x68] sm:$0xff] }
   0xb   :  { %v25_v29 = vld [vmem:[%s754_s0 + $0x70] sm:$0xff]  ;;  %v26_v30 = vld [vmem:[%s754_s0 + $0x78] sm:$0xff]  ;;  %v295_v38 = vld [vmem:[%s753_s1 + $0x20] sm:$0xff] }
   0xc   :  { %568 = vmatprep.mubr.msk.f32.mxu1 %vm309_vm1, %v295_v38  ;;  %v296_v57 = vld [vmem:[%s753_s1 + $0x28] sm:$0xff]  ;;  %v393_v5 = vld [vmem:[%s753_s1 + $0x30] sm:$0xff] }
   0xe   :  { %274 = vperm.xlu1 %598, %v65_v6  }
  0x12   :  { %279 = vperm.xlu1 %598, %v66_v7  }
  0x16   :  { %284 = vperm.xlu1 %598, %v67_v8  }
  0x1a   :  { %301 = vperm.xlu1 %598, %v297_v9  }
  0x1e   :  { %306 = vperm.xlu1 %598, %v298_v10  }
  0x22   :  { %397 = vperm.xlu1 %598, %v394_v11  }
  0x24   :  { %27 = vxpose.xlu0.b32.start [1/16] (narrow) %v11_v12, 32 }
  0x26   :  { %480 = vperm.xlu1 %598, %v475_v13  }
  0x28   :  { %28 = vxpose.xlu0.b32.cont [2/16] (narrow) %v12_v14, 32 }
  0x2a   :  { %492 = vperm.xlu1 %598, %v476_v15  }
  0x2c   :  { %29 = vxpose.xlu0.b32.cont [3/16] (narrow) %v13_v16, 32 }
  0x2e   :  { %505 = vperm.xlu1 %598, %v477_v22  }
  0x30   :  { %30 = vxpose.xlu0.b32.cont [4/16] (narrow) %v14_v17, 32 }
  0x34   :  { %31 = vxpose.xlu0.b32.cont [5/16] (narrow) %v15_v18, 32 }
  0x38   :  { %32 = vxpose.xlu0.b32.cont [6/16] (narrow) %v16_v19, 32 }
  0x3c   :  { %33 = vxpose.xlu0.b32.cont [7/16] (narrow) %v17_v20, 32 }
  0x40   :  { %34 = vxpose.xlu0.b32.cont [8/16] (narrow) %v18_v21, 32 }
  0x44   :  { %35 = vxpose.xlu0.b32.cont [9/16] (narrow) %v19_v23, 32 }
  0x48   :  { %36 = vxpose.xlu0.b32.cont [10/16] (narrow) %v20_v24, 32 }
  0x4c   :  { %37 = vxpose.xlu0.b32.cont [11/16] (narrow) %v21_v25, 32 }
  0x50   :  { %38 = vxpose.xlu0.b32.cont [12/16] (narrow) %v22_v26, 32 }
  0x54   :  { %39 = vxpose.xlu0.b32.cont [13/16] (narrow) %v23_v27, 32 }
  0x58   :  { %40 = vxpose.xlu0.b32.cont [14/16] (narrow) %v24_v28, 32 }
  0x5c   :  { %41 = vxpose.xlu0.b32.cont [15/16] (narrow) %v25_v29, 32 }
  0x60   :  { %42 = vxpose.xlu0.b32.end [16/16] (narrow) %v26_v30, 32 }
  0x74   :  { %v73_v31 = vpop.permute.xlu0 %72  ;;  %v77_v35 = vpop.permute.xlu1 %76 }
  0x75   :  { %546 = vmatprep.mubr.msk.f32.mxu0 %vm80_vm0, %v73_v31 }
  0x78   :  { %v75_v32 = vpop.permute.xlu0 %74  ;;  %v79_v37 = vpop.permute.xlu1 %78 }
  0x89   :  { %599 = vset.pattern.permute.xlu0 %v600_v2  ;;  %v270_v39 = vpop.permute.xlu1 %269 }
  0x8d   :  { %v275_v40 = vpop.permute.xlu1 %274 }
  0x91   :  { %v280_v41 = vpop.permute.xlu1 %279 }
  0x95   :  { %v285_v47 = vpop.permute.xlu1 %284 }
  0x99   :  { %v302_v60 = vpop.permute.xlu1 %301 }
  0x9d   :  { %v307_v61 = vpop.permute.xlu1 %306 }
  0xa1   :  { %v398_v6 = vpop.permute.xlu1 %397 }
  0xa4   :  { %v43_v33 = vpop.trf.xlu0 }
  0xa5   :  { %v481_v7 = vpop.permute.xlu1 %480 }
  0xa8   :  { %v725_v34 = vpop.trf.xlu0 }
  0xa9   :  { %v493_v10 = vpop.permute.xlu1 %492 }
  0xac   :  { %v45_v36 = vpop.trf.xlu0 }
  0xad   :  { %544 = vmatprep.subr.mxu0 %v45_v36  ;;  %v506_v30 = vpop.permute.xlu1 %505 }
  0xae   :  { %545 = vmatpush3.msra.mxu0 %v45_v36 }
  0xaf   :  { %547 = vmatmul.mubr.msk.f32.vlgmr.msra.gmra.mrb[0].mxu0 %vm80_vm0, %v75_v32  ;;  %552 = vmatprep.subr.mxu0 %v43_v33 }
  0xb0   :  { %549 = vmatprep.mubr.msk.f32.mxu0 %vm80_vm0, %v77_v35  ;;  %553 = vmatpush3.msra.mxu0 %v43_v33  ;;  %v46_v8 = vpop.trf.xlu0 }
  0xb1   :  { %v59_v9 = vmul.f32 %v46_v8, %v725_v34 }
  0xb3   :  { %550 = vmatmul.mubr.msk.f32.gmra.mrb[2].mxu0 %vm80_vm0, %v79_v37  ;;  %v495_v11 = vmul.f32 %v493_v10, %v59_v9 }
  0xb4   :  { %554 = vmatprep.mubr.msk.f32.mxu0 %vm80_vm0, %v623_v0 }
  0xb5   :  { %v496_v12 = vrot.slane %v495_v11, 4 }
  0xb7   :  { %555 = vmatmul.mubr.msk.f32.vlgmr.msra.gmra.mrb[0].mxu0 %vm80_vm0, %v636_v3  ;;  %v497_v14 = vadd.f32 %v496_v12, %v495_v11 }
  0xb8   :  { %557 = vmatprep.mubr.msk.f32.mxu0 %vm80_vm0, %v628_v1 }
  0xb9   :  { %v498_v18 = vrot.slane %v497_v14, 2 }
  0xbb   :  { %558 = vmatmul.mubr.msk.f32.gmra.mrb[2].mxu0 %vm80_vm0, %v641_v4  ;;  %v499_v21 = vadd.f32 %v498_v18, %v497_v14 }
  0xbd   :  { %v500_v24 = vrot.slane %v499_v21, 1 }
  0xbf   :  { %v501_v27 = vadd.f32 %v500_v24, %v499_v21 }
 0x18a   :  { %v556_v42 = vpop.f32.mrb[0].mxu0 }
 0x18b   :  { %v288_v43 = vadd.f32 %v556_v42, %v275_v40  ;;  %v248_v44 = vpop.f32.mrb[1].mxu0 }
 0x18c   :  { %v287_v45 = vadd.f32 %v270_v39, %v248_v44 }
 0x18d   :  { %v292_v46 = vmax.f32 %v288_v43, 0.0 }
 0x18e   :  { %v291_v48 = vmax.f32 %v287_v45, 0.0  ;;  %v559_v49 = vpop.f32.mrb[2].mxu0 }
 0x18f   :  { %v290_v50 = vadd.f32 %v559_v49, %v285_v47  ;;  %v258_v51 = vpop.f32.mrb[3].mxu0 }
 0x190   :  { %v289_v52 = vadd.f32 %v280_v41, %v258_v51  ;;  %v578_v53 = vpack.c.bf16 %v292_v46, %v291_v48 }
 0x191   :  { %v294_v54 = vmax.f32 %v290_v50, 0.0 }
 0x192   :  { %v293_v55 = vmax.f32 %v289_v52, 0.0  ;;  %579 = vmatprep.subr.bf16.mxu1 %v578_v53 }
 0x193   :  { %581 = vmatpush3.bf16.msra.mxu1 %v578_v53 }
 0x194   :  { %v582_v56 = vpack.c.bf16 %v294_v54, %v293_v55 }
 0x196   :  { %583 = vmatprep.subr.bf16.mxu1 %v582_v56 }
 0x197   :  { %585 = vmatpush3.bf16.msra.mxu1 %v582_v56 }
 0x198   :  { %586 = vmatprep.subr.bf16.mxu1 %v602_v58 }
 0x19a   :  { %569 = vmatmul.mubr.msk.f32.vlgmr.msra.gmra.mrb[0].mxu1 %vm309_vm1, %v296_v57 }
 0x19b   :  { %575 = vmatprep.mubr.msk.f32.mxu1 %vm603_vm2, %v604_v59 }
 0x26d   :  { %v570_v62 = vpop.f32.mrb[0].mxu1 }
 0x26e   :  { %v388_v63 = vadd.f32 %v570_v62, %v307_v61  ;;  %v382_v0 = vpop.f32.mrb[1].mxu1 }
 0x26f   :  { %v383_v1 = vadd.f32 %v382_v0, %v302_v60 }
 0x270   :  { %v392_v2 = vmax.f32 %v388_v63, 0.0 }
 0x271   :  { %v391_v3 = vmax.f32 %v383_v1, 0.0 }
 0x273   :  { %v587_v4 = vpack.c.bf16 %v392_v2, %v391_v3 }
 0x275   :  { %588 = vmatpush3.bf16.msra.mxu1 %v587_v4 }
 0x278   :  { %576 = vmatmul.mubr.msk.f32.vlgmr.msra.gmra.mrb[2].mxu1 %vm400_vm3, %v393_v5 }
 0x34b   :  { %v470_v13 = vpop.f32.mrb[2].mxu1 }
 0x34c   :  { %v471_v15 = vadd.f32 %v470_v13, %v398_v6  ;;  %v577_v16 = vpop.f32.mrb[3].mxu1 }
 0x34e   :  { %v474_v17 = vmax.f32 %v471_v15, 0.0 }
 0x350   :  { %v483_v19 = vmul.f32 %v481_v7, %v474_v17 }
 0x352   :  { %v484_v20 = vrot.slane %v483_v19, 4 }
 0x354   :  { %v485_v22 = vadd.f32 %v484_v20, %v483_v19 }
 0x356   :  { %v486_v23 = vrot.slane %v485_v22, 2 }
 0x358   :  { %v487_v25 = vadd.f32 %v486_v23, %v485_v22 }
 0x35a   :  { %v488_v26 = vrot.slane %v487_v25, 1 }
 0x35c   :  { %v489_v28 = vadd.f32 %v488_v26, %v487_v25 }
 0x35e   :  { %v502_v29 = vadd.f32 %v501_v27, %v489_v28 }
 0x360   :  { %v508_v31 = vadd.f32 %v506_v30, %v502_v29 }
 0x362   :  { %509 = vst [vmem:[%s755_s2] sm:$0x1] %v508_v31 }

</bundles_post_ra>
